<compile_context>
chip_gen: v7x
topology: tpu7x:2x2x1
jax: 0.10.0
libtpu: 0.0.40
codegen_flags: <defaults>
</compile_context>

<pallas_src>
import jax
import jax.numpy as jnp
from jax.experimental import pallas as pl
from jax.experimental.pallas import tpu as pltpu

MIN_VALUE = 0.0
MAX_VALUE = 4.0
NORM = MAX_VALUE          # module default: Norm=None -> Norm = max_value
_INV_NORM = 1.0 / NORM


def _spike(x):
    # MultiSpike forward: round(clamp(x, 0, 4)) / 4  (jnp.round == torch.round)
    return jnp.round(jnp.clip(x, MIN_VALUE, MAX_VALUE)) * _INV_NORM


# -----------------------------------------------------------------------------
# Kernel 1: spike -> 1x1 conv (GEMM) -> BN, row-tiled over B*H*W.
# -----------------------------------------------------------------------------
def _pw_conv_bn_kernel(x_ref, w_ref, s_ref, b_ref, o_ref):
    x = _spike(x_ref[...].astype(jnp.float32))
    y = jnp.dot(x, w_ref[...].astype(jnp.float32),
                preferred_element_type=jnp.float32)
    y = y * s_ref[...] + b_ref[...]
    o_ref[...] = y.astype(o_ref.dtype)


def _pick_row_tile(n):
    # Largest tile dividing n (blocks stay big: this path is HBM-bound).
    for t in (4096, 2048, 1024, 512, 256, 128, 64, 32, 16, 8):
        if n % t == 0:
            return t
    return n  # ragged small n: full extent (legal — equals the array dim)


def _pw_conv_bn(x2d, w, scale, bias):
    n, cin = x2d.shape
    cout = w.shape[1]
    tn = _pick_row_tile(n)
    return pl.pallas_call(
        _pw_conv_bn_kernel,
        out_shape=jax.ShapeDtypeStruct((n, cout), x2d.dtype),
        grid=(n // tn,),
        in_specs=[
            pl.BlockSpec((tn, cin), lambda i: (i, 0)),
            pl.BlockSpec((cin, cout), lambda i: (0, 0)),
            pl.BlockSpec((1, cout), lambda i: (0, 0)),
            pl.BlockSpec((1, cout), lambda i: (0, 0)),
        ],
        out_specs=pl.BlockSpec((tn, cout), lambda i: (i, 0)),
        compiler_params=pltpu.CompilerParams(
            dimension_semantics=("parallel",)),
    )(x2d, w, scale, bias)


# -----------------------------------------------------------------------------
# Kernel 2: SepConv tail, per batch element:
#   spike -> depthwise 7x7 -> 1x1 pwconv -> BN -> + residual(x)
# Input is zero-halo-padded by 3; spike(0) == 0 so padding semantics match.
# -----------------------------------------------------------------------------
def _sepconv_tail_kernel(xp_ref, dw_ref, pw_ref, s_ref, b_ref, r_ref, o_ref):
    h, w = o_ref.shape[1], o_ref.shape[2]
    med = xp_ref.shape[3]
    cout = o_ref.shape[3]

    x = _spike(xp_ref[0].astype(jnp.float32))        # (h+6, w+6, med)
    taps = dw_ref[...].astype(jnp.float32)           # (49, 1, 1, med)

    acc = jnp.zeros((h, w, med), jnp.float32)
    for t in range(49):                              # depthwise 7x7 (VPU)
        dh, dcol = t // 7, t % 7
        acc = acc + x[dh:dh + h, dcol:dcol + w, :] * taps[t]

    y = jnp.dot(acc.reshape(h * w, med), pw_ref[...].astype(jnp.float32),
                preferred_element_type=jnp.float32)  # 1x1 pwconv2 (MXU)
    y = y * s_ref[...] + b_ref[...]                  # folded BN2
    y = y.reshape(h, w, cout) + r_ref[0].astype(jnp.float32)
    o_ref[0] = y.astype(o_ref.dtype)


def _sepconv_tail(xpad, dw_w, pw_w, scale, bias, residual):
    B, HP, WP, med = xpad.shape
    H, W = HP - 6, WP - 6
    cout = pw_w.shape[1]
    return pl.pallas_call(
        _sepconv_tail_kernel,
        out_shape=jax.ShapeDtypeStruct((B, H, W, cout), residual.dtype),
        grid=(B,),
        in_specs=[
            pl.BlockSpec((1, HP, WP, med), lambda b: (b, 0, 0, 0)),
            pl.BlockSpec((49, 1, 1, med), lambda b: (0, 0, 0, 0)),
            pl.BlockSpec((med, cout), lambda b: (0, 0)),
            pl.BlockSpec((1, cout), lambda b: (0, 0)),
            pl.BlockSpec((1, cout), lambda b: (0, 0)),
            pl.BlockSpec((1, H, W, cout), lambda b: (b, 0, 0, 0)),
        ],
        out_specs=pl.BlockSpec((1, H, W, cout), lambda b: (b, 0, 0, 0)),
        compiler_params=pltpu.CompilerParams(
            dimension_semantics=("parallel",)),
    )(xpad, dw_w, pw_w, scale, bias, residual)


# -----------------------------------------------------------------------------
# Kernel 3/4: spike -> dense 3x3 conv (9 shifted GEMM taps) -> BN (-> +residual)
# Input is zero-halo-padded by 1; spike(0) == 0 so padding semantics match.
# -----------------------------------------------------------------------------
def _make_conv3x3_kernel(has_residual):
    def kernel(xp_ref, w_ref, s_ref, b_ref, *rest):
        if has_residual:
            r_ref, o_ref = rest
        else:
            (o_ref,) = rest
        h, w = o_ref.shape[1], o_ref.shape[2]
        cin = xp_ref.shape[3]
        cout = o_ref.shape[3]

        x = _spike(xp_ref[0].astype(jnp.float32))    # (h+2, w+2, cin)
        wt = w_ref[...].astype(jnp.float32)          # (9, cin, cout)

        acc = jnp.zeros((h * w, cout), jnp.float32)
        for t in range(9):
            dh, dcol = t // 3, t % 3
            patch = x[dh:dh + h, dcol:dcol + w, :].reshape(h * w, cin)
            acc = acc + jnp.dot(patch, wt[t],
                                preferred_element_type=jnp.float32)

        y = acc * s_ref[...] + b_ref[...]            # folded BN
        y = y.reshape(h, w, cout)
        if has_residual:
            y = y + r_ref[0].astype(jnp.float32)
        o_ref[0] = y.astype(o_ref.dtype)
    return kernel


def _conv3x3_bn(xpad, w, scale, bias, *, residual=None):
    B, HP, WP, cin = xpad.shape
    H, W = HP - 2, WP - 2
    cout = w.shape[2]
    in_specs = [
        pl.BlockSpec((1, HP, WP, cin), lambda b: (b, 0, 0, 0)),
        pl.BlockSpec((9, cin, cout), lambda b: (0, 0, 0)),
        pl.BlockSpec((1, cout), lambda b: (0, 0)),
        pl.BlockSpec((1, cout), lambda b: (0, 0)),
    ]
    args = [xpad, w, scale, bias]
    if residual is not None:
        in_specs.append(pl.BlockSpec((1, H, W, cout), lambda b: (b, 0, 0, 0)))
        args.append(residual)
    return pl.pallas_call(
        _make_conv3x3_kernel(residual is not None),
        out_shape=jax.ShapeDtypeStruct((B, H, W, cout), xpad.dtype),
        grid=(B,),
        in_specs=in_specs,
        out_specs=pl.BlockSpec((1, H, W, cout), lambda b: (b, 0, 0, 0)),
        compiler_params=pltpu.CompilerParams(
            dimension_semantics=("parallel",)),
    )(*args)


# -----------------------------------------------------------------------------
# Full MS_ConvBlock forward (NCHW in / NCHW out).
# -----------------------------------------------------------------------------
def ms_convblock_forward(x_nchw, p, *, return_intermediates=False):
    B, C, H, W = x_nchw.shape
    xn = jnp.transpose(x_nchw, (0, 2, 3, 1))         # NHWC: channels -> lanes
    med = p["pw1_w"].shape[1]

    # SepConv first half: spike1 -> pwconv1 -> bn1
    y1 = _pw_conv_bn(xn.reshape(B * H * W, C), p["pw1_w"],
                     p["sep1_scale"], p["sep1_bias"]).reshape(B, H, W, med)

    # SepConv tail + residual: spike2 -> dw7x7 -> pwconv2 -> bn2 -> +x
    y1p = jnp.pad(y1, ((0, 0), (3, 3), (3, 3), (0, 0)))
    s = _sepconv_tail(y1p, p["dw_w"], p["pw2_w"],
                      p["sep2_scale"], p["sep2_bias"], xn)     # == x_feat

    # MLP part: spike1 -> conv1(3x3) -> bn1
    sp = jnp.pad(s, ((0, 0), (1, 1), (1, 1), (0, 0)))
    z = _conv3x3_bn(sp, p["c1_w"], p["blk1_scale"], p["blk1_bias"])

    # spike2 -> conv2(3x3) -> bn2 -> + x_feat
    zp = jnp.pad(z, ((0, 0), (1, 1), (1, 1), (0, 0)))
    out = _conv3x3_bn(zp, p["c2_w"], p["blk2_scale"], p["blk2_bias"],
                      residual=s)

    out_nchw = jnp.transpose(out, (0, 3, 1, 2))
    if return_intermediates:
        inter = dict(y1=jnp.transpose(y1, (0, 3, 1, 2)),
                     s=jnp.transpose(s, (0, 3, 1, 2)),
                     z=jnp.transpose(z, (0, 3, 1, 2)))
        return out_nchw, inter
    return out_nchw


# -----------------------------------------------------------------------------
# Example + verification against the PyTorch semantics (pure-JAX reference).
# -----------------------------------------------------------------------------
if __name__ == "__main__":
    B, dim, H, W = 2, 4, 16, 16
    med = 2 * dim                 # SepConv expansion_ratio=2
    hid = int(4.0 * dim)          # MS_ConvBlock mlp_ratio=4.0
    eps = 1e-5

    key = jax.random.PRNGKey(0)
    ks = jax.random.split(key, 10)
    x = jax.random.normal(ks[0], (B, dim, H, W), jnp.float32) * 2.0

    # Weights in PyTorch OIHW layout.
    pw1_w_oihw = jax.random.normal(ks[1], (med, dim, 1, 1), jnp.float32) * dim ** -0.5
    dw_w_oihw = jax.random.normal(ks[2], (med, 1, 7, 7), jnp.float32) * 49 ** -0.5
    pw2_w_oihw = jax.random.normal(ks[3], (dim, med, 1, 1), jnp.float32) * med ** -0.5
    c1_w_oihw = jax.random.normal(ks[4], (hid, dim, 3, 3), jnp.float32) * (9 * dim) ** -0.5
    c2_w_oihw = jax.random.normal(ks[5], (dim, hid, 3, 3), jnp.float32) * (9 * hid) ** -0.5

    def bn_init(k, c):
        k1, k2, k3, k4 = jax.random.split(k, 4)
        gamma = 1.0 + 0.1 * jax.random.normal(k1, (c,), jnp.float32)
        beta = 0.1 * jax.random.normal(k2, (c,), jnp.float32)
        mean = 0.1 * jax.random.normal(k3, (c,), jnp.float32)
        var = 0.8 + 0.4 * jax.random.uniform(k4, (c,), jnp.float32)
        return gamma, beta, mean, var

    sep_bn1, sep_bn2 = bn_init(ks[6], med), bn_init(ks[7], dim)
    blk_bn1, blk_bn2 = bn_init(ks[8], hid), bn_init(ks[9], dim)

    def fold_bn(bn):
        gamma, beta, mean, var = bn
        scale = gamma / jnp.sqrt(var + eps)
        return scale.reshape(1, -1), (beta - mean * scale).reshape(1, -1)

    s1, b1 = fold_bn(sep_bn1)
    s2, b2 = fold_bn(sep_bn2)
    s3, b3 = fold_bn(blk_bn1)
    s4, b4 = fold_bn(blk_bn2)

    params = dict(
        pw1_w=jnp.transpose(pw1_w_oihw[:, :, 0, 0], (1, 0)),           # (dim, med)
        sep1_scale=s1, sep1_bias=b1,
        dw_w=jnp.transpose(dw_w_oihw[:, 0, :, :], (1, 2, 0)).reshape(49, 1, 1, med),
        pw2_w=jnp.transpose(pw2_w_oihw[:, :, 0, 0], (1, 0)),           # (med, dim)
        sep2_scale=s2, sep2_bias=b2,
        c1_w=jnp.transpose(c1_w_oihw, (2, 3, 1, 0)).reshape(9, dim, hid),
        blk1_scale=s3, blk1_bias=b3,
        c2_w=jnp.transpose(c2_w_oihw, (2, 3, 1, 0)).reshape(9, hid, dim),
        blk2_scale=s4, blk2_bias=b4,
    )

    out, inter = jax.block_until_ready(
        ms_convblock_forward(x, params, return_intermediates=True))

    # ---- pure-JAX reference of the PyTorch forward ----
    def spike_ref(v):
        return jnp.round(jnp.clip(v, MIN_VALUE, MAX_VALUE)) / NORM

    def conv_ref(v, w_oihw, pad, groups=1):
        return jax.lax.conv_general_dilated(
            v, w_oihw, (1, 1), ((pad, pad), (pad, pad)),
            dimension_numbers=("NCHW", "OIHW", "NCHW"),
            feature_group_count=groups,
            precision=jax.lax.Precision.HIGHEST)

    def bn_ref(v, bn):
        gamma, beta, mean, var = bn
        inv = (gamma / jnp.sqrt(var + eps))[None, :, None, None]
        return (v - mean[None, :, None, None]) * inv + beta[None, :, None, None]

    # Stage-by-stage check of the exact PyTorch ops; each reference stage is
    # fed the kernel chain's own intermediate so tiny matmul rounding
    # differences cannot flip the spike quantizer between the two pipelines.
    y1_ref = bn_ref(conv_ref(spike_ref(x), pw1_w_oihw, 0), sep_bn1)
    s_ref = bn_ref(conv_ref(conv_ref(spike_ref(inter["y1"]), dw_w_oihw, 3,
                                     groups=med), pw2_w_oihw, 0), sep_bn2) + x
    z_ref = bn_ref(conv_ref(spike_ref(inter["s"]), c1_w_oihw, 1), blk_bn1)
    out_ref = inter["s"] + bn_ref(conv_ref(spike_ref(inter["z"]), c2_w_oihw, 1),
                                  blk_bn2)

    tol = dict(atol=1e-2, rtol=1e-2)
    assert out.shape == x.shape and out.dtype == x.dtype
    assert jnp.allclose(inter["y1"], y1_ref, **tol), "pwconv1 stage mismatch"
    assert jnp.allclose(inter["s"], s_ref, **tol), "SepConv tail stage mismatch"
    assert jnp.allclose(inter["z"], z_ref, **tol), "conv1 stage mismatch"
    assert jnp.allclose(out, out_ref, **tol), "conv2 / output stage mismatch"

    print("KERNEL_OK")
</pallas_src>

<mosaic_0001>
module attributes {stable_mosaic.version = 11 : i64} {
  func.func @_pw_conv_bn_kernel(%arg0: i32, %arg1: memref<512x4xf32, #tpu.memory_space<vmem>>, %arg2: memref<4x8xf32, #tpu.memory_space<vmem>>, %arg3: memref<1x8xf32, #tpu.memory_space<vmem>>, %arg4: memref<1x8xf32, #tpu.memory_space<vmem>>, %arg5: memref<512x8xf32, #tpu.memory_space<vmem>>) attributes {dimension_semantics = [#tpu.dimension_semantics<parallel>], iteration_bounds = array<i64: 1>, scalar_prefetch = 0 : i64, scratch_operands = 0 : i64, tpu.core_type = #tpu.core_type<tc>, window_params = [{transform_indices = @transform_0, window_bounds = array<i64: 512, 4>}, {pipeline_mode = #tpu.pipeline_mode<synchronous>, transform_indices = @transform_1, window_bounds = array<i64: 4, 8>}, {pipeline_mode = #tpu.pipeline_mode<synchronous>, transform_indices = @transform_2, window_bounds = array<i64: 1, 8>}, {pipeline_mode = #tpu.pipeline_mode<synchronous>, transform_indices = @transform_3, window_bounds = array<i64: 1, 8>}, {transform_indices = @transform_4, window_bounds = array<i64: 512, 8>}]} {
    %c0 = arith.constant 0 : index
    %c0_0 = arith.constant 0 : index
    %0 = vector.load %arg1[%c0, %c0_0] : memref<512x4xf32, #tpu.memory_space<vmem>>, vector<512x4xf32>
    %cst = arith.constant 0.000000e+00 : f32
    %cst_1 = arith.constant 4.000000e+00 : f32
    %1 = vector.broadcast %cst : f32 to vector<512x4xf32>
    %2 = arith.maximumf %1, %0 : vector<512x4xf32>
    %3 = vector.broadcast %cst_1 : f32 to vector<512x4xf32>
    %4 = arith.minimumf %3, %2 : vector<512x4xf32>
    %5 = math.roundeven %4 : vector<512x4xf32>
    %cst_2 = arith.constant 2.500000e-01 : f32
    %6 = vector.broadcast %cst_2 : f32 to vector<512x4xf32>
    %7 = arith.mulf %5, %6 : vector<512x4xf32>
    %c0_3 = arith.constant 0 : index
    %c0_4 = arith.constant 0 : index
    %8 = vector.load %arg2[%c0_3, %c0_4] : memref<4x8xf32, #tpu.memory_space<vmem>>, vector<4x8xf32>
    %cst_5 = arith.constant dense<0.000000e+00> : vector<512x8xf32>
    %9 = tpu.matmul %7, %8, %cst_5 {dimension_numbers = #tpu.dot_dimension_numbers<[1], [0], [0], [1], [0, 0, 1, 1], [], []>} : vector<512x4xf32>, vector<4x8xf32>, vector<512x8xf32> -> vector<512x8xf32>
    %c0_6 = arith.constant 0 : index
    %c0_7 = arith.constant 0 : index
    %10 = vector.load %arg3[%c0_6, %c0_7] : memref<1x8xf32, #tpu.memory_space<vmem>>, vector<1x8xf32>
    %11 = vector.broadcast %10 : vector<1x8xf32> to vector<512x8xf32>
    %12 = arith.mulf %9, %11 : vector<512x8xf32>
    %c0_8 = arith.constant 0 : index
    %c0_9 = arith.constant 0 : index
    %13 = vector.load %arg4[%c0_8, %c0_9] : memref<1x8xf32, #tpu.memory_space<vmem>>, vector<1x8xf32>
    %14 = vector.broadcast %13 : vector<1x8xf32> to vector<512x8xf32>
    %15 = arith.addf %12, %14 : vector<512x8xf32>
    %c0_10 = arith.constant 0 : index
    %c0_11 = arith.constant 0 : index
    %16 = vector.load %arg5[%c0_10, %c0_11] : memref<512x8xf32, #tpu.memory_space<vmem>>, vector<512x8xf32>
    tpu.vector_store %arg5[%c0_10, %c0_11], %15 {strides = array<i32>} : memref<512x8xf32, #tpu.memory_space<vmem>>, vector<512x8xf32>,
    return
  }
  func.func @transform_0(%arg0: i32) -> (i32, i32) {
    %c0_i32 = arith.constant 0 : i32
    %c0_i32_0 = arith.constant 0 : i32
    return %arg0, %c0_i32 : i32, i32
  }
  func.func @transform_1(%arg0: i32) -> (i32, i32) {
    %c0_i32 = arith.constant 0 : i32
    %c0_i32_0 = arith.constant 0 : i32
    %c0_i32_1 = arith.constant 0 : i32
    return %c0_i32, %c0_i32_0 : i32, i32
  }
  func.func @transform_2(%arg0: i32) -> (i32, i32) {
    %c0_i32 = arith.constant 0 : i32
    %c0_i32_0 = arith.constant 0 : i32
    %c0_i32_1 = arith.constant 0 : i32
    return %c0_i32, %c0_i32_0 : i32, i32
  }
  func.func @transform_3(%arg0: i32) -> (i32, i32) {
    %c0_i32 = arith.constant 0 : i32
    %c0_i32_0 = arith.constant 0 : i32
    %c0_i32_1 = arith.constant 0 : i32
    return %c0_i32, %c0_i32_0 : i32, i32
  }
  func.func @transform_4(%arg0: i32) -> (i32, i32) {
    %c0_i32 = arith.constant 0 : i32
    %c0_i32_0 = arith.constant 0 : i32
    return %arg0, %c0_i32 : i32, i32
  }
}

</mosaic_0001>

<bundles_post_ra>
// kernel: tpu_custom_call.1
= control target key start
LH: loop header
LB: loop body
LE: loop exit
PB: predicated region body
PF: predicated region fallthrough
CT: control target
= control target key end

     0   :  { %vm531_vm0 = vcmask 1043456   ;;  %vm338_vm1 = vcmask 31744   ;;  %vm1062_vm2 = vcmask 64512   ;;  %s2105_s1 = inlined_call_operand.vmem [shape: f32[4,8], index: 1, kind: input, shape index: {}]   ;;  %s2106_s0 = inlined_call_operand.vmem [shape: f32[512,4], index: 0, kind: input, shape index: {}]   ;;  %s2107_s2 = inlined_call_operand.vmem [shape: f32[1,8], index: 2, kind: input, shape index: {}]   ;;  %s2108_s3 = inlined_call_operand.vmem [shape: f32[1,8], index: 3, kind: input, shape index: {}]   ;;  %s2109_s4 = inlined_call_operand.vmem [shape: f32[512,8], index: 4, kind: output, shape index: {}]  }
   0x1   :  { %v337_v0 = vld [vmem:[%s2105_s1] sm:$0xf]  ;;  %v18_v5 = vld [vmem:[%s2106_s0 + $0x8] sm:$0xff]  ;;  %v19_v7 = vld [vmem:[%s2106_s0 + $0x10] sm:$0xff] }
   0x2   :  { %v17_v1 = vld [vmem:[%s2106_s0] sm:$0xff]  ;;  %1263 = vmatprep.subr.msk.mxu0 %vm531_vm0, %v337_v0  ;;  %1361 = vmatprep.subr.msk.mxu1 %vm531_vm0, %v337_v0  ;;  %v50_v6 = vld [vmem:[%s2106_s0 + $0x108] sm:$0xff]  ;;  %v82_v8 = vmax.f32 %v18_v5, 0.0  ;;  %v83_v10 = vmax.f32 %v19_v7, 0.0  ;;  %v51_v11 = vld [vmem:[%s2106_s0 + $0x110] sm:$0xff] }
   0x3   :  { %v49_v2 = vld [vmem:[%s2106_s0 + $0x100] sm:$0xff]  ;;  %v81_v3 = vmax.f32 %v17_v1, 0.0  ;;  %1264 = vmatpush3.msk.msra.mxu0 %vm531_vm0, %v337_v0  ;;  %1362 = vmatpush3.msk.msra.mxu1 %vm531_vm0, %v337_v0  ;;  %v114_v9 = vmax.f32 %v50_v6, 0.0  ;;  %v20_v12 = vld [vmem:[%s2106_s0 + $0x18] sm:$0xff]  ;;  %v115_v16 = vmax.f32 %v51_v11, 0.0  ;;  %v22_v36 = vld [vmem:[%s2106_s0 + $0x28] sm:$0xff] }
   0x4   :  { %v113_v4 = vmax.f32 %v49_v2, 0.0  ;;  %v52_v13 = vld [vmem:[%s2106_s0 + $0x118] sm:$0xff]  ;;  %v84_v17 = vmax.f32 %v20_v12, 0.0  ;;  %v146_v18 = vmin.f32 %v82_v8, 4.0  ;;  %v147_v20 = vmin.f32 %v83_v10, 4.0  ;;  %v21_v30 = vld [vmem:[%s2106_s0 + $0x20] sm:$0xff] }
   0x5   :  { %v145_v14 = vmin.f32 %v81_v3, 4.0  ;;  %v178_v19 = vmin.f32 %v114_v9, 4.0  ;;  %v116_v21 = vmax.f32 %v52_v13, 0.0  ;;  %v179_v24 = vmin.f32 %v115_v16, 4.0  ;;  %v53_v31 = vld [vmem:[%s2106_s0 + $0x120] sm:$0xff]  ;;  %v54_v37 = vld [vmem:[%s2106_s0 + $0x128] sm:$0xff] }
   0x6   :  { %v177_v15 = vmin.f32 %v113_v4, 4.0  ;;  %v148_v25 = vmin.f32 %v84_v17, 4.0  ;;  %v1364_v26 = vround.rtne.f32 %v146_v18  ;;  %v1365_v28 = vround.rtne.f32 %v147_v20  ;;  %v23_v38 = vld [vmem:[%s2106_s0 + $0x30] sm:$0xff]  ;;  %v24_v44 = vld [vmem:[%s2106_s0 + $0x38] sm:$0xff]  ;;  %v25_v6 = vld [vmem:[%s2106_s0 + $0x40] sm:$0xff] }
   0x7   :  { %v1363_v22 = vround.rtne.f32 %v145_v14  ;;  %v1396_v27 = vround.rtne.f32 %v178_v19  ;;  %v180_v29 = vmin.f32 %v116_v21, 4.0  ;;  %v1397_v34 = vround.rtne.f32 %v179_v24  ;;  %v55_v43 = vld [vmem:[%s2106_s0 + $0x130] sm:$0xff]  ;;  %v56_v49 = vld [vmem:[%s2106_s0 + $0x138] sm:$0xff]  ;;  %v57_v7 = vld [vmem:[%s2106_s0 + $0x140] sm:$0xff] }
   0x8   :  { %v1395_v23 = vround.rtne.f32 %v177_v15  ;;  %v1366_v35 = vround.rtne.f32 %v148_v25  ;;  %v274_v39 = vmul.f32 0.25, %v1364_v26  ;;  %v275_v41 = vmul.f32 0.25, %v1365_v28  ;;  %v26_v12 = vld [vmem:[%s2106_s0 + $0x48] sm:$0xff]  ;;  %v27_v14 = vld [vmem:[%s2106_s0 + $0x50] sm:$0xff]  ;;  %v28_v20 = vld [vmem:[%s2106_s0 + $0x58] sm:$0xff] }
   0x9   :  { %v273_v32 = vmul.f32 0.25, %v1363_v22  ;;  %v306_v40 = vmul.f32 0.25, %v1396_v27  ;;  %v1398_v42 = vround.rtne.f32 %v180_v29  ;;  %v307_v45 = vmul.f32 0.25, %v1397_v34  ;;  %v58_v13 = vld [vmem:[%s2106_s0 + $0x148] sm:$0xff]  ;;  %v59_v19 = vld [vmem:[%s2106_s0 + $0x150] sm:$0xff]  ;;  %v60_v25 = vld [vmem:[%s2106_s0 + $0x158] sm:$0xff] }
   0xa   :  { %v305_v33 = vmul.f32 0.25, %v1395_v23  ;;  %v276_v46 = vmul.f32 0.25, %v1366_v35  ;;  %v85_v47 = vmax.f32 %v21_v30, 0.0  ;;  %v117_v48 = vmax.f32 %v53_v31, 0.0 }
   0xb   :  { %1265 = vmatprep.mubr.msk.f32.mxu0 %vm338_vm1, %v273_v32  ;;  %v308_v50 = vmul.f32 0.25, %v1398_v42  ;;  %v86_v51 = vmax.f32 %v22_v36, 0.0  ;;  %v118_v52 = vmax.f32 %v54_v37, 0.0  ;;  %v87_v53 = vmax.f32 %v23_v38, 0.0 }
   0xc   :  { %1313 = vmatprep.mubr.msk.f32.mxu1 %vm338_vm1, %v305_v33  ;;  %1266 = vmatmul.mubr.msk.f32.vlgmr.msra.gmra.mrb[0].mxu0 %vm338_vm1, %v274_v39  ;;  %v149_v54 = vmin.f32 %v85_v47, 4.0  ;;  %v181_v55 = vmin.f32 %v117_v48, 4.0  ;;  %v119_v56 = vmax.f32 %v55_v43, 0.0  ;;  %v88_v57 = vmax.f32 %v24_v44, 0.0  ;;  %v61_v47 = vld [vmem:[%s2106_s0 + $0x160] sm:$0xff] }
   0xd   :  { %1314 = vmatmul.mubr.msk.f32.vlgmr.msra.gmra.mrb[0].mxu1 %vm338_vm1, %v306_v40  ;;  %1268 = vmatprep.mubr.msk.f32.mxu0 %vm338_vm1, %v275_v41  ;;  %v150_v58 = vmin.f32 %v86_v51, 4.0  ;;  %v182_v59 = vmin.f32 %v118_v52, 4.0  ;;  %v151_v60 = vmin.f32 %v87_v53, 4.0  ;;  %v120_v61 = vmax.f32 %v56_v49, 0.0  ;;  %v30_v52 = vld [vmem:[%s2106_s0 + $0x68] sm:$0xff] }
   0xe   :  { %1316 = vmatprep.mubr.msk.f32.mxu1 %vm338_vm1, %v307_v45  ;;  %v1367_v62 = vround.rtne.f32 %v149_v54  ;;  %v1399_v63 = vround.rtne.f32 %v181_v55  ;;  %v183_v0 = vmin.f32 %v119_v56, 4.0  ;;  %v152_v1 = vmin.f32 %v88_v57, 4.0  ;;  %v62_v53 = vld [vmem:[%s2106_s0 + $0x168] sm:$0xff]  ;;  %v31_v54 = vld [vmem:[%s2106_s0 + $0x70] sm:$0xff] }
   0xf   :  { %v1368_v2 = vround.rtne.f32 %v150_v58  ;;  %v1400_v3 = vround.rtne.f32 %v182_v59  ;;  %v1369_v4 = vround.rtne.f32 %v151_v60  ;;  %v184_v5 = vmin.f32 %v120_v61, 4.0  ;;  %v63_v59 = vld [vmem:[%s2106_s0 + $0x170] sm:$0xff]  ;;  %v32_v60 = vld [vmem:[%s2106_s0 + $0x78] sm:$0xff] }
  0x10   :  { %1269 = vmatmul.mubr.msk.f32.gmra.mrb[2].mxu0 %vm338_vm1, %v276_v46  ;;  %v277_v8 = vmul.f32 0.25, %v1367_v62  ;;  %v309_v9 = vmul.f32 0.25, %v1399_v63  ;;  %v1401_v10 = vround.rtne.f32 %v183_v0  ;;  %v1370_v11 = vround.rtne.f32 %v152_v1  ;;  %v29_v46 = vld [vmem:[%s2106_s0 + $0x60] sm:$0xff]  ;;  %v64_v1 = vld [vmem:[%s2106_s0 + $0x178] sm:$0xff] }
  0x11   :  { %1317 = vmatmul.mubr.msk.f32.gmra.mrb[2].mxu1 %vm338_vm1, %v308_v50  ;;  %v278_v15 = vmul.f32 0.25, %v1368_v2  ;;  %v310_v16 = vmul.f32 0.25, %v1400_v3  ;;  %v279_v17 = vmul.f32 0.25, %v1369_v4  ;;  %v1402_v18 = vround.rtne.f32 %v184_v5 }
  0x12   :  { %1271 = vmatprep.mubr.msk.f32.mxu0 %vm338_vm1, %v277_v8  ;;  %1319 = vmatprep.mubr.msk.f32.mxu1 %vm338_vm1, %v309_v9  ;;  %v311_v21 = vmul.f32 0.25, %v1401_v10  ;;  %v280_v22 = vmul.f32 0.25, %v1370_v11  ;;  %v89_v23 = vmax.f32 %v25_v6, 0.0  ;;  %v121_v24 = vmax.f32 %v57_v7, 0.0 }
  0x13   :  { %v312_v26 = vmul.f32 0.25, %v1402_v18  ;;  %v90_v27 = vmax.f32 %v26_v12, 0.0  ;;  %v122_v28 = vmax.f32 %v58_v13, 0.0  ;;  %v91_v29 = vmax.f32 %v27_v14, 0.0 }
  0x14   :  { %1272 = vmatmul.mubr.msk.f32.gmra.mrb[4].mxu0 %vm338_vm1, %v278_v15  ;;  %v153_v30 = vmin.f32 %v89_v23, 4.0  ;;  %v185_v31 = vmin.f32 %v121_v24, 4.0  ;;  %v123_v32 = vmax.f32 %v59_v19, 0.0  ;;  %v92_v33 = vmax.f32 %v28_v20, 0.0  ;;  %v65_v23 = vld [vmem:[%s2106_s0 + $0x180] sm:$0xff] }
  0x15   :  { %1320 = vmatmul.mubr.msk.f32.gmra.mrb[4].mxu1 %vm338_vm1, %v310_v16  ;;  %1274 = vmatprep.mubr.msk.f32.mxu0 %vm338_vm1, %v279_v17  ;;  %v154_v34 = vmin.f32 %v90_v27, 4.0  ;;  %v186_v35 = vmin.f32 %v122_v28, 4.0  ;;  %v155_v36 = vmin.f32 %v91_v29, 4.0  ;;  %v124_v37 = vmax.f32 %v60_v25, 0.0  ;;  %v34_v28 = vld [vmem:[%s2106_s0 + $0x88] sm:$0xff] }
  0x16   :  { %1322 = vmatprep.mubr.msk.f32.mxu1 %vm338_vm1, %v311_v21  ;;  %v1371_v38 = vround.rtne.f32 %v153_v30  ;;  %v1403_v39 = vround.rtne.f32 %v185_v31  ;;  %v187_v40 = vmin.f32 %v123_v32, 4.0  ;;  %v156_v41 = vmin.f32 %v92_v33, 4.0  ;;  %v66_v29 = vld [vmem:[%s2106_s0 + $0x188] sm:$0xff]  ;;  %v35_v30 = vld [vmem:[%s2106_s0 + $0x90] sm:$0xff] }
  0x17   :  { %v1372_v42 = vround.rtne.f32 %v154_v34  ;;  %v1404_v43 = vround.rtne.f32 %v186_v35  ;;  %v1373_v44 = vround.rtne.f32 %v155_v36  ;;  %v188_v45 = vmin.f32 %v124_v37, 4.0  ;;  %v67_v35 = vld [vmem:[%s2106_s0 + $0x190] sm:$0xff]  ;;  %v36_v36 = vld [vmem:[%s2106_s0 + $0x98] sm:$0xff] }
  0x18   :  { %1275 = vmatmul.mubr.msk.f32.gmra.mrb[6].mxu0 %vm338_vm1, %v280_v22  ;;  %v281_v48 = vmul.f32 0.25, %v1371_v38  ;;  %v313_v49 = vmul.f32 0.25, %v1403_v39  ;;  %v1405_v50 = vround.rtne.f32 %v187_v40  ;;  %v1374_v51 = vround.rtne.f32 %v156_v41  ;;  %v33_v22 = vld [vmem:[%s2106_s0 + $0x80] sm:$0xff]  ;;  %v68_v41 = vld [vmem:[%s2106_s0 + $0x198] sm:$0xff] }
  0x19   :  { %1323 = vmatmul.mubr.msk.f32.gmra.mrb[6].mxu1 %vm338_vm1, %v312_v26  ;;  %v282_v55 = vmul.f32 0.25, %v1372_v42  ;;  %v314_v56 = vmul.f32 0.25, %v1404_v43  ;;  %v283_v57 = vmul.f32 0.25, %v1373_v44  ;;  %v1406_v58 = vround.rtne.f32 %v188_v45 }
  0x1a   :  { %1277 = vmatprep.mubr.msk.f32.mxu0 %vm338_vm1, %v281_v48  ;;  %1325 = vmatprep.mubr.msk.f32.mxu1 %vm338_vm1, %v313_v49  ;;  %v315_v61 = vmul.f32 0.25, %v1405_v50  ;;  %v284_v62 = vmul.f32 0.25, %v1374_v51  ;;  %v93_v63 = vmax.f32 %v29_v46, 0.0  ;;  %v125_v0 = vmax.f32 %v61_v47, 0.0 }
  0x1b   :  { %v316_v2 = vmul.f32 0.25, %v1406_v58  ;;  %v94_v3 = vmax.f32 %v30_v52, 0.0  ;;  %v126_v4 = vmax.f32 %v62_v53, 0.0  ;;  %v95_v5 = vmax.f32 %v31_v54, 0.0 }
  0x1c   :  { %1278 = vmatmul.mubr.msk.f32.gmra.mrb[8].mxu0 %vm338_vm1, %v282_v55  ;;  %v157_v6 = vmin.f32 %v93_v63, 4.0  ;;  %v189_v7 = vmin.f32 %v125_v0, 4.0  ;;  %v127_v8 = vmax.f32 %v63_v59, 0.0  ;;  %v96_v9 = vmax.f32 %v32_v60, 0.0  ;;  %v69_v63 = vld [vmem:[%s2106_s0 + $0x1a0] sm:$0xff] }
  0x1d   :  { %1326 = vmatmul.mubr.msk.f32.gmra.mrb[8].mxu1 %vm338_vm1, %v314_v56  ;;  %1280 = vmatprep.mubr.msk.f32.mxu0 %vm338_vm1, %v283_v57  ;;  %v158_v10 = vmin.f32 %v94_v3, 4.0  ;;  %v190_v11 = vmin.f32 %v126_v4, 4.0  ;;  %v159_v12 = vmin.f32 %v95_v5, 4.0  ;;  %v128_v13 = vmax.f32 %v64_v1, 0.0  ;;  %v38_v4 = vld [vmem:[%s2106_s0 + $0xa8] sm:$0xff] }
  0x1e   :  { %1328 = vmatprep.mubr.msk.f32.mxu1 %vm338_vm1, %v315_v61  ;;  %v1375_v14 = vround.rtne.f32 %v157_v6  ;;  %v1407_v15 = vround.rtne.f32 %v189_v7  ;;  %v191_v16 = vmin.f32 %v127_v8, 4.0  ;;  %v160_v17 = vmin.f32 %v96_v9, 4.0  ;;  %v70_v5 = vld [vmem:[%s2106_s0 + $0x1a8] sm:$0xff]  ;;  %v39_v6 = vld [vmem:[%s2106_s0 + $0xb0] sm:$0xff] }
  0x1f   :  { %v1376_v18 = vround.rtne.f32 %v158_v10  ;;  %v1408_v19 = vround.rtne.f32 %v190_v11  ;;  %v1377_v20 = vround.rtne.f32 %v159_v12  ;;  %v192_v21 = vmin.f32 %v128_v13, 4.0  ;;  %v71_v11 = vld [vmem:[%s2106_s0 + $0x1b0] sm:$0xff]  ;;  %v40_v12 = vld [vmem:[%s2106_s0 + $0xb8] sm:$0xff] }
  0x20   :  { %1281 = vmatmul.mubr.msk.f32.gmra.mrb[10].mxu0 %vm338_vm1, %v284_v62  ;;  %v285_v24 = vmul.f32 0.25, %v1375_v14  ;;  %v317_v25 = vmul.f32 0.25, %v1407_v15  ;;  %v1409_v26 = vround.rtne.f32 %v191_v16  ;;  %v1378_v27 = vround.rtne.f32 %v160_v17  ;;  %v37_v62 = vld [vmem:[%s2106_s0 + $0xa0] sm:$0xff]  ;;  %v72_v17 = vld [vmem:[%s2106_s0 + $0x1b8] sm:$0xff] }
  0x21   :  { %1329 = vmatmul.mubr.msk.f32.gmra.mrb[10].mxu1 %vm338_vm1, %v316_v2  ;;  %v286_v31 = vmul.f32 0.25, %v1376_v18  ;;  %v318_v32 = vmul.f32 0.25, %v1408_v19  ;;  %v287_v33 = vmul.f32 0.25, %v1377_v20  ;;  %v1410_v34 = vround.rtne.f32 %v192_v21 }
  0x22   :  { %1283 = vmatprep.mubr.msk.f32.mxu0 %vm338_vm1, %v285_v24  ;;  %1331 = vmatprep.mubr.msk.f32.mxu1 %vm338_vm1, %v317_v25  ;;  %v319_v37 = vmul.f32 0.25, %v1409_v26  ;;  %v288_v38 = vmul.f32 0.25, %v1378_v27  ;;  %v97_v39 = vmax.f32 %v33_v22, 0.0  ;;  %v129_v40 = vmax.f32 %v65_v23, 0.0 }
  0x23   :  { %v320_v42 = vmul.f32 0.25, %v1410_v34  ;;  %v98_v43 = vmax.f32 %v34_v28, 0.0  ;;  %v130_v44 = vmax.f32 %v66_v29, 0.0  ;;  %v99_v45 = vmax.f32 %v35_v30, 0.0 }
  0x24   :  { %1284 = vmatmul.mubr.msk.f32.gmra.mrb[12].mxu0 %vm338_vm1, %v286_v31  ;;  %v161_v46 = vmin.f32 %v97_v39, 4.0  ;;  %v193_v47 = vmin.f32 %v129_v40, 4.0  ;;  %v131_v48 = vmax.f32 %v67_v35, 0.0  ;;  %v100_v49 = vmax.f32 %v36_v36, 0.0  ;;  %v73_v39 = vld [vmem:[%s2106_s0 + $0x1c0] sm:$0xff] }
  0x25   :  { %1332 = vmatmul.mubr.msk.f32.gmra.mrb[12].mxu1 %vm338_vm1, %v318_v32  ;;  %1286 = vmatprep.mubr.msk.f32.mxu0 %vm338_vm1, %v287_v33  ;;  %v162_v50 = vmin.f32 %v98_v43, 4.0  ;;  %v194_v51 = vmin.f32 %v130_v44, 4.0  ;;  %v163_v52 = vmin.f32 %v99_v45, 4.0  ;;  %v132_v53 = vmax.f32 %v68_v41, 0.0  ;;  %v42_v44 = vld [vmem:[%s2106_s0 + $0xc8] sm:$0xff] }
  0x26   :  { %1334 = vmatprep.mubr.msk.f32.mxu1 %vm338_vm1, %v319_v37  ;;  %v1379_v54 = vround.rtne.f32 %v161_v46  ;;  %v1411_v55 = vround.rtne.f32 %v193_v47  ;;  %v195_v56 = vmin.f32 %v131_v48, 4.0  ;;  %v164_v57 = vmin.f32 %v100_v49, 4.0  ;;  %v74_v45 = vld [vmem:[%s2106_s0 + $0x1c8] sm:$0xff]  ;;  %v43_v46 = vld [vmem:[%s2106_s0 + $0xd0] sm:$0xff] }
  0x27   :  { %v1380_v58 = vround.rtne.f32 %v162_v50  ;;  %v1412_v59 = vround.rtne.f32 %v194_v51  ;;  %v1381_v60 = vround.rtne.f32 %v163_v52  ;;  %v196_v61 = vmin.f32 %v132_v53, 4.0  ;;  %v75_v51 = vld [vmem:[%s2106_s0 + $0x1d0] sm:$0xff]  ;;  %v44_v52 = vld [vmem:[%s2106_s0 + $0xd8] sm:$0xff] }
  0x28   :  { %1287 = vmatmul.mubr.msk.f32.gmra.mrb[14].mxu0 %vm338_vm1, %v288_v38  ;;  %v289_v0 = vmul.f32 0.25, %v1379_v54  ;;  %v321_v1 = vmul.f32 0.25, %v1411_v55  ;;  %v1413_v2 = vround.rtne.f32 %v195_v56  ;;  %v1382_v3 = vround.rtne.f32 %v164_v57  ;;  %v41_v38 = vld [vmem:[%s2106_s0 + $0xc0] sm:$0xff]  ;;  %v76_v57 = vld [vmem:[%s2106_s0 + $0x1d8] sm:$0xff] }
  0x29   :  { %1335 = vmatmul.mubr.msk.f32.gmra.mrb[14].mxu1 %vm338_vm1, %v320_v42  ;;  %v290_v7 = vmul.f32 0.25, %v1380_v58  ;;  %v322_v8 = vmul.f32 0.25, %v1412_v59  ;;  %v291_v9 = vmul.f32 0.25, %v1381_v60  ;;  %v1414_v10 = vround.rtne.f32 %v196_v61 }
  0x2a   :  { %1289 = vmatprep.mubr.msk.f32.mxu0 %vm338_vm1, %v289_v0  ;;  %1337 = vmatprep.mubr.msk.f32.mxu1 %vm338_vm1, %v321_v1  ;;  %v323_v13 = vmul.f32 0.25, %v1413_v2  ;;  %v292_v14 = vmul.f32 0.25, %v1382_v3  ;;  %v101_v15 = vmax.f32 %v37_v62, 0.0  ;;  %v133_v16 = vmax.f32 %v69_v63, 0.0 }
  0x2b   :  { %v324_v18 = vmul.f32 0.25, %v1414_v10  ;;  %v102_v19 = vmax.f32 %v38_v4, 0.0  ;;  %v134_v20 = vmax.f32 %v70_v5, 0.0  ;;  %v103_v21 = vmax.f32 %v39_v6, 0.0 }
  0x2c   :  { %1290 = vmatmul.mubr.msk.f32.gmra.mrb[16].mxu0 %vm338_vm1, %v290_v7  ;;  %v165_v22 = vmin.f32 %v101_v15, 4.0  ;;  %v197_v23 = vmin.f32 %v133_v16, 4.0  ;;  %v135_v24 = vmax.f32 %v71_v11, 0.0  ;;  %v104_v25 = vmax.f32 %v40_v12, 0.0  ;;  %v77_v15 = vld [vmem:[%s2106_s0 + $0x1e0] sm:$0xff] }
  0x2d   :  { %1338 = vmatmul.mubr.msk.f32.gmra.mrb[16].mxu1 %vm338_vm1, %v322_v8  ;;  %1292 = vmatprep.mubr.msk.f32.mxu0 %vm338_vm1, %v291_v9  ;;  %v166_v26 = vmin.f32 %v102_v19, 4.0  ;;  %v198_v27 = vmin.f32 %v134_v20, 4.0  ;;  %v167_v28 = vmin.f32 %v103_v21, 4.0  ;;  %v136_v29 = vmax.f32 %v72_v17, 0.0  ;;  %v46_v20 = vld [vmem:[%s2106_s0 + $0xe8] sm:$0xff] }
  0x2e   :  { %1340 = vmatprep.mubr.msk.f32.mxu1 %vm338_vm1, %v323_v13  ;;  %v1383_v30 = vround.rtne.f32 %v165_v22  ;;  %v1415_v31 = vround.rtne.f32 %v197_v23  ;;  %v199_v32 = vmin.f32 %v135_v24, 4.0  ;;  %v168_v33 = vmin.f32 %v104_v25, 4.0  ;;  %v78_v21 = vld [vmem:[%s2106_s0 + $0x1e8] sm:$0xff]  ;;  %v47_v22 = vld [vmem:[%s2106_s0 + $0xf0] sm:$0xff] }
  0x2f   :  { %v1384_v34 = vround.rtne.f32 %v166_v26  ;;  %v1416_v35 = vround.rtne.f32 %v198_v27  ;;  %v1385_v36 = vround.rtne.f32 %v167_v28  ;;  %v200_v37 = vmin.f32 %v136_v29, 4.0  ;;  %v79_v27 = vld [vmem:[%s2106_s0 + $0x1f0] sm:$0xff]  ;;  %v48_v28 = vld [vmem:[%s2106_s0 + $0xf8] sm:$0xff] }
  0x30   :  { %1293 = vmatmul.mubr.msk.f32.gmra.mrb[18].mxu0 %vm338_vm1, %v292_v14  ;;  %v293_v40 = vmul.f32 0.25, %v1383_v30  ;;  %v325_v41 = vmul.f32 0.25, %v1415_v31  ;;  %v1417_v42 = vround.rtne.f32 %v199_v32  ;;  %v1386_v43 = vround.rtne.f32 %v168_v33  ;;  %v45_v14 = vld [vmem:[%s2106_s0 + $0xe0] sm:$0xff]  ;;  %v80_v33 = vld [vmem:[%s2106_s0 + $0x1f8] sm:$0xff] }
  0x31   :  { %1341 = vmatmul.mubr.msk.f32.gmra.mrb[18].mxu1 %vm338_vm1, %v324_v18  ;;  %v294_v47 = vmul.f32 0.25, %v1384_v34  ;;  %v326_v48 = vmul.f32 0.25, %v1416_v35  ;;  %v295_v49 = vmul.f32 0.25, %v1385_v36  ;;  %v1418_v50 = vround.rtne.f32 %v200_v37 }
  0x32   :  { %1295 = vmatprep.mubr.msk.f32.mxu0 %vm338_vm1, %v293_v40  ;;  %1343 = vmatprep.mubr.msk.f32.mxu1 %vm338_vm1, %v325_v41  ;;  %v327_v53 = vmul.f32 0.25, %v1417_v42  ;;  %v296_v54 = vmul.f32 0.25, %v1386_v43  ;;  %v105_v55 = vmax.f32 %v41_v38, 0.0  ;;  %v137_v56 = vmax.f32 %v73_v39, 0.0 }
  0x33   :  { %v328_v58 = vmul.f32 0.25, %v1418_v50  ;;  %v106_v59 = vmax.f32 %v42_v44, 0.0  ;;  %v138_v60 = vmax.f32 %v74_v45, 0.0  ;;  %v107_v61 = vmax.f32 %v43_v46, 0.0 }
  0x34   :  { %1296 = vmatmul.mubr.msk.f32.gmra.mrb[20].mxu0 %vm338_vm1, %v294_v47  ;;  %v169_v62 = vmin.f32 %v105_v55, 4.0  ;;  %v201_v63 = vmin.f32 %v137_v56, 4.0  ;;  %v139_v0 = vmax.f32 %v75_v51, 0.0  ;;  %v108_v1 = vmax.f32 %v44_v52, 0.0 }
  0x35   :  { %1344 = vmatmul.mubr.msk.f32.gmra.mrb[20].mxu1 %vm338_vm1, %v326_v48  ;;  %1298 = vmatprep.mubr.msk.f32.mxu0 %vm338_vm1, %v295_v49  ;;  %v170_v2 = vmin.f32 %v106_v59, 4.0  ;;  %v202_v3 = vmin.f32 %v138_v60, 4.0  ;;  %v171_v4 = vmin.f32 %v107_v61, 4.0  ;;  %v140_v5 = vmax.f32 %v76_v57, 0.0 }
  0x36   :  { %1346 = vmatprep.mubr.msk.f32.mxu1 %vm338_vm1, %v327_v53  ;;  %v1387_v6 = vround.rtne.f32 %v169_v62  ;;  %v1419_v7 = vround.rtne.f32 %v201_v63  ;;  %v203_v8 = vmin.f32 %v139_v0, 4.0  ;;  %v172_v9 = vmin.f32 %v108_v1, 4.0  ;;  %v1714_v1 = vld [vmem:[%s2107_s2] ss:$0 sm:$0xff] }
  0x37   :  { %v1388_v10 = vround.rtne.f32 %v170_v2  ;;  %v1420_v11 = vround.rtne.f32 %v202_v3  ;;  %v1389_v12 = vround.rtne.f32 %v171_v4  ;;  %v204_v13 = vmin.f32 %v140_v5, 4.0  ;;  %v1719_v3 = vld [vmem:[%s2108_s3] ss:$0 sm:$0xff] }
  0x38   :  { %1299 = vmatmul.mubr.msk.f32.gmra.mrb[22].mxu0 %vm338_vm1, %v296_v54  ;;  %v297_v16 = vmul.f32 0.25, %v1387_v6  ;;  %v329_v17 = vmul.f32 0.25, %v1419_v7  ;;  %v1421_v18 = vround.rtne.f32 %v203_v8  ;;  %v1390_v19 = vround.rtne.f32 %v172_v9 }
  0x39   :  { %1347 = vmatmul.mubr.msk.f32.gmra.mrb[22].mxu1 %vm338_vm1, %v328_v58  ;;  %v298_v23 = vmul.f32 0.25, %v1388_v10  ;;  %v330_v24 = vmul.f32 0.25, %v1420_v11  ;;  %v299_v25 = vmul.f32 0.25, %v1389_v12  ;;  %v1422_v26 = vround.rtne.f32 %v204_v13 }
  0x3a   :  { %1301 = vmatprep.mubr.msk.f32.mxu0 %vm338_vm1, %v297_v16  ;;  %1349 = vmatprep.mubr.msk.f32.mxu1 %vm338_vm1, %v329_v17  ;;  %v331_v29 = vmul.f32 0.25, %v1421_v18  ;;  %v300_v30 = vmul.f32 0.25, %v1390_v19  ;;  %v109_v31 = vmax.f32 %v45_v14, 0.0  ;;  %v141_v32 = vmax.f32 %v77_v15, 0.0 }
  0x3b   :  { %v332_v34 = vmul.f32 0.25, %v1422_v26  ;;  %v110_v35 = vmax.f32 %v46_v20, 0.0  ;;  %v142_v36 = vmax.f32 %v78_v21, 0.0  ;;  %v111_v37 = vmax.f32 %v47_v22, 0.0 }
  0x3c   :  { %1302 = vmatmul.mubr.msk.f32.gmra.mrb[24].mxu0 %vm338_vm1, %v298_v23  ;;  %v173_v38 = vmin.f32 %v109_v31, 4.0  ;;  %v205_v39 = vmin.f32 %v141_v32, 4.0  ;;  %v143_v40 = vmax.f32 %v79_v27, 0.0  ;;  %v112_v41 = vmax.f32 %v48_v28, 0.0 }
  0x3d   :  { %1350 = vmatmul.mubr.msk.f32.gmra.mrb[24].mxu1 %vm338_vm1, %v330_v24  ;;  %1304 = vmatprep.mubr.msk.f32.mxu0 %vm338_vm1, %v299_v25  ;;  %v174_v42 = vmin.f32 %v110_v35, 4.0  ;;  %v206_v43 = vmin.f32 %v142_v36, 4.0  ;;  %v175_v44 = vmin.f32 %v111_v37, 4.0  ;;  %v144_v45 = vmax.f32 %v80_v33, 0.0 }
  0x3e   :  { %1352 = vmatprep.mubr.msk.f32.mxu1 %vm338_vm1, %v331_v29  ;;  %v1391_v46 = vround.rtne.f32 %v173_v38  ;;  %v1423_v47 = vround.rtne.f32 %v205_v39  ;;  %v207_v48 = vmin.f32 %v143_v40, 4.0  ;;  %v176_v49 = vmin.f32 %v112_v41, 4.0 }
  0x3f   :  { %v1392_v50 = vround.rtne.f32 %v174_v42  ;;  %v1424_v51 = vround.rtne.f32 %v206_v43  ;;  %v1393_v52 = vround.rtne.f32 %v175_v44  ;;  %v208_v53 = vmin.f32 %v144_v45, 4.0 }
  0x40   :  { %1305 = vmatmul.mubr.msk.f32.gmra.mrb[26].mxu0 %vm338_vm1, %v300_v30  ;;  %v301_v54 = vmul.f32 0.25, %v1391_v46  ;;  %v333_v55 = vmul.f32 0.25, %v1423_v47  ;;  %v1425_v56 = vround.rtne.f32 %v207_v48  ;;  %v1394_v57 = vround.rtne.f32 %v176_v49 }
  0x41   :  { %1353 = vmatmul.mubr.msk.f32.gmra.mrb[26].mxu1 %vm338_vm1, %v332_v34  ;;  %v302_v58 = vmul.f32 0.25, %v1392_v50  ;;  %v334_v59 = vmul.f32 0.25, %v1424_v51  ;;  %v303_v60 = vmul.f32 0.25, %v1393_v52  ;;  %v1426_v61 = vround.rtne.f32 %v208_v53 }
  0x42   :  { %1307 = vmatprep.mubr.msk.f32.mxu0 %vm338_vm1, %v301_v54  ;;  %1355 = vmatprep.mubr.msk.f32.mxu1 %vm338_vm1, %v333_v55  ;;  %v335_v62 = vmul.f32 0.25, %v1425_v56  ;;  %v304_v63 = vmul.f32 0.25, %v1394_v57 }
  0x43   :  { %v336_v0 = vmul.f32 0.25, %v1426_v61 }
  0x44   :  { %1308 = vmatmul.mubr.msk.f32.gmra.mrb[28].mxu0 %vm338_vm1, %v302_v58 }
  0x45   :  { %1356 = vmatmul.mubr.msk.f32.gmra.mrb[28].mxu1 %vm338_vm1, %v334_v59  ;;  %1310 = vmatprep.mubr.msk.f32.mxu0 %vm338_vm1, %v303_v60 }
  0x46   :  { %1358 = vmatprep.mubr.msk.f32.mxu1 %vm338_vm1, %v335_v62 }
  0x48   :  { %1311 = vmatmul.mubr.msk.f32.gmra.mrb[30].mxu0 %vm338_vm1, %v304_v63 }
  0x49   :  { %1359 = vmatmul.mubr.msk.f32.gmra.mrb[30].mxu1 %vm338_vm1, %v336_v0 }
  0xdf   :  { %v1267_v2 = vpop.f32.mrb[0].mxu0 }
  0xe0   :  { %v1315_v4 = vpop.f32.mrb[0].mxu1  ;;  %v928_v5 = vmul.f32 %v1267_v2, %v1714_v1  ;;  %v601_v7 = vpop.f32.mrb[1].mxu0 }
  0xe1   :  { %v960_v6 = vmul.f32 %v1315_v4, %v1714_v1  ;;  %v761_v8 = vpop.f32.mrb[1].mxu1  ;;  %v927_v9 = vmul.f32 %v1714_v1, %v601_v7 }
  0xe2   :  { %v959_v10 = vmul.f32 %v1714_v1, %v761_v8  ;;  %v999_v11 = vadd.f32 %v1719_v3, %v928_v5 }
  0xe3   :  { %v1031_v12 = vadd.f32 %v1719_v3, %v960_v6  ;;  %v998_v13 = vadd.f32 %v1719_v3, %v927_v9  ;;  %v1270_v15 = vpop.f32.mrb[2].mxu0 }
  0xe4   :  { %v1030_v14 = vadd.f32 %v1719_v3, %v959_v10  ;;  %v1318_v16 = vpop.f32.mrb[2].mxu1  ;;  %1064 = vst.msk [vmem:[%s2109_s4 + $0x8] sm:$0xff] %vm1062_vm2, %v999_v11  ;;  %v930_v17 = vmul.f32 %v1270_v15, %v1714_v1  ;;  %v611_v19 = vpop.f32.mrb[3].mxu0 }
  0xe5   :  { %1096 = vst.msk [vmem:[%s2109_s4 + $0x108] sm:$0xff] %vm1062_vm2, %v1031_v12  ;;  %v962_v18 = vmul.f32 %v1318_v16, %v1714_v1  ;;  %v771_v20 = vpop.f32.mrb[3].mxu1  ;;  %1063 = vst.msk [vmem:[%s2109_s4] sm:$0xff] %vm1062_vm2, %v998_v13  ;;  %v929_v21 = vmul.f32 %v1714_v1, %v611_v19 }
  0xe6   :  { %1095 = vst.msk [vmem:[%s2109_s4 + $0x100] sm:$0xff] %vm1062_vm2, %v1030_v14  ;;  %v961_v22 = vmul.f32 %v1714_v1, %v771_v20  ;;  %v1001_v23 = vadd.f32 %v1719_v3, %v930_v17 }
  0xe7   :  { %v1033_v24 = vadd.f32 %v1719_v3, %v962_v18  ;;  %v1000_v25 = vadd.f32 %v1719_v3, %v929_v21  ;;  %v1273_v27 = vpop.f32.mrb[4].mxu0 }
  0xe8   :  { %v1032_v26 = vadd.f32 %v1719_v3, %v961_v22  ;;  %v1321_v28 = vpop.f32.mrb[4].mxu1  ;;  %1066 = vst.msk [vmem:[%s2109_s4 + $0x18] sm:$0xff] %vm1062_vm2, %v1001_v23  ;;  %v932_v29 = vmul.f32 %v1273_v27, %v1714_v1  ;;  %v621_v31 = vpop.f32.mrb[5].mxu0 }
  0xe9   :  { %1098 = vst.msk [vmem:[%s2109_s4 + $0x118] sm:$0xff] %vm1062_vm2, %v1033_v24  ;;  %v964_v30 = vmul.f32 %v1321_v28, %v1714_v1  ;;  %v781_v32 = vpop.f32.mrb[5].mxu1  ;;  %1065 = vst.msk [vmem:[%s2109_s4 + $0x10] sm:$0xff] %vm1062_vm2, %v1000_v25  ;;  %v931_v33 = vmul.f32 %v1714_v1, %v621_v31 }
  0xea   :  { %1097 = vst.msk [vmem:[%s2109_s4 + $0x110] sm:$0xff] %vm1062_vm2, %v1032_v26  ;;  %v963_v34 = vmul.f32 %v1714_v1, %v781_v32  ;;  %v1003_v35 = vadd.f32 %v1719_v3, %v932_v29 }
  0xeb   :  { %v1035_v36 = vadd.f32 %v1719_v3, %v964_v30  ;;  %v1002_v37 = vadd.f32 %v1719_v3, %v931_v33  ;;  %v1276_v39 = vpop.f32.mrb[6].mxu0 }
  0xec   :  { %v1034_v38 = vadd.f32 %v1719_v3, %v963_v34  ;;  %v1324_v40 = vpop.f32.mrb[6].mxu1  ;;  %1068 = vst.msk [vmem:[%s2109_s4 + $0x28] sm:$0xff] %vm1062_vm2, %v1003_v35  ;;  %v934_v41 = vmul.f32 %v1276_v39, %v1714_v1  ;;  %v631_v43 = vpop.f32.mrb[7].mxu0 }
  0xed   :  { %1100 = vst.msk [vmem:[%s2109_s4 + $0x128] sm:$0xff] %vm1062_vm2, %v1035_v36  ;;  %v966_v42 = vmul.f32 %v1324_v40, %v1714_v1  ;;  %v791_v44 = vpop.f32.mrb[7].mxu1  ;;  %1067 = vst.msk [vmem:[%s2109_s4 + $0x20] sm:$0xff] %vm1062_vm2, %v1002_v37  ;;  %v933_v45 = vmul.f32 %v1714_v1, %v631_v43 }
  0xee   :  { %1099 = vst.msk [vmem:[%s2109_s4 + $0x120] sm:$0xff] %vm1062_vm2, %v1034_v38  ;;  %v965_v46 = vmul.f32 %v1714_v1, %v791_v44  ;;  %v1005_v47 = vadd.f32 %v1719_v3, %v934_v41 }
  0xef   :  { %v1037_v48 = vadd.f32 %v1719_v3, %v966_v42  ;;  %v1004_v49 = vadd.f32 %v1719_v3, %v933_v45  ;;  %v1279_v51 = vpop.f32.mrb[8].mxu0 }
  0xf0   :  { %v1036_v50 = vadd.f32 %v1719_v3, %v965_v46  ;;  %v1327_v52 = vpop.f32.mrb[8].mxu1  ;;  %1070 = vst.msk [vmem:[%s2109_s4 + $0x38] sm:$0xff] %vm1062_vm2, %v1005_v47  ;;  %v936_v53 = vmul.f32 %v1279_v51, %v1714_v1  ;;  %v641_v55 = vpop.f32.mrb[9].mxu0 }
  0xf1   :  { %1102 = vst.msk [vmem:[%s2109_s4 + $0x138] sm:$0xff] %vm1062_vm2, %v1037_v48  ;;  %v968_v54 = vmul.f32 %v1327_v52, %v1714_v1  ;;  %v801_v56 = vpop.f32.mrb[9].mxu1  ;;  %1069 = vst.msk [vmem:[%s2109_s4 + $0x30] sm:$0xff] %vm1062_vm2, %v1004_v49  ;;  %v935_v57 = vmul.f32 %v1714_v1, %v641_v55 }
  0xf2   :  { %1101 = vst.msk [vmem:[%s2109_s4 + $0x130] sm:$0xff] %vm1062_vm2, %v1036_v50  ;;  %v967_v58 = vmul.f32 %v1714_v1, %v801_v56  ;;  %v1007_v59 = vadd.f32 %v1719_v3, %v936_v53 }
  0xf3   :  { %v1039_v60 = vadd.f32 %v1719_v3, %v968_v54  ;;  %v1006_v61 = vadd.f32 %v1719_v3, %v935_v57  ;;  %v1282_v63 = vpop.f32.mrb[10].mxu0 }
  0xf4   :  { %v1038_v62 = vadd.f32 %v1719_v3, %v967_v58  ;;  %v1330_v0 = vpop.f32.mrb[10].mxu1  ;;  %1072 = vst.msk [vmem:[%s2109_s4 + $0x48] sm:$0xff] %vm1062_vm2, %v1007_v59  ;;  %v938_v2 = vmul.f32 %v1282_v63, %v1714_v1  ;;  %v651_v5 = vpop.f32.mrb[11].mxu0 }
  0xf5   :  { %1104 = vst.msk [vmem:[%s2109_s4 + $0x148] sm:$0xff] %vm1062_vm2, %v1039_v60  ;;  %v970_v4 = vmul.f32 %v1330_v0, %v1714_v1  ;;  %v811_v6 = vpop.f32.mrb[11].mxu1  ;;  %1071 = vst.msk [vmem:[%s2109_s4 + $0x40] sm:$0xff] %vm1062_vm2, %v1006_v61  ;;  %v937_v7 = vmul.f32 %v1714_v1, %v651_v5 }
  0xf6   :  { %1103 = vst.msk [vmem:[%s2109_s4 + $0x140] sm:$0xff] %vm1062_vm2, %v1038_v62  ;;  %v969_v8 = vmul.f32 %v1714_v1, %v811_v6  ;;  %v1009_v9 = vadd.f32 %v1719_v3, %v938_v2 }
  0xf7   :  { %v1041_v10 = vadd.f32 %v1719_v3, %v970_v4  ;;  %v1008_v11 = vadd.f32 %v1719_v3, %v937_v7  ;;  %v1285_v13 = vpop.f32.mrb[12].mxu0 }
  0xf8   :  { %v1040_v12 = vadd.f32 %v1719_v3, %v969_v8  ;;  %v1333_v14 = vpop.f32.mrb[12].mxu1  ;;  %1074 = vst.msk [vmem:[%s2109_s4 + $0x58] sm:$0xff] %vm1062_vm2, %v1009_v9  ;;  %v940_v15 = vmul.f32 %v1285_v13, %v1714_v1  ;;  %v661_v17 = vpop.f32.mrb[13].mxu0 }
  0xf9   :  { %1106 = vst.msk [vmem:[%s2109_s4 + $0x158] sm:$0xff] %vm1062_vm2, %v1041_v10  ;;  %v972_v16 = vmul.f32 %v1333_v14, %v1714_v1  ;;  %v821_v18 = vpop.f32.mrb[13].mxu1  ;;  %1073 = vst.msk [vmem:[%s2109_s4 + $0x50] sm:$0xff] %vm1062_vm2, %v1008_v11  ;;  %v939_v19 = vmul.f32 %v1714_v1, %v661_v17 }
  0xfa   :  { %1105 = vst.msk [vmem:[%s2109_s4 + $0x150] sm:$0xff] %vm1062_vm2, %v1040_v12  ;;  %v971_v20 = vmul.f32 %v1714_v1, %v821_v18  ;;  %v1011_v21 = vadd.f32 %v1719_v3, %v940_v15 }
  0xfb   :  { %v1043_v22 = vadd.f32 %v1719_v3, %v972_v16  ;;  %v1010_v23 = vadd.f32 %v1719_v3, %v939_v19  ;;  %v1288_v25 = vpop.f32.mrb[14].mxu0 }
  0xfc   :  { %v1042_v24 = vadd.f32 %v1719_v3, %v971_v20  ;;  %v1336_v26 = vpop.f32.mrb[14].mxu1  ;;  %1076 = vst.msk [vmem:[%s2109_s4 + $0x68] sm:$0xff] %vm1062_vm2, %v1011_v21  ;;  %v942_v27 = vmul.f32 %v1288_v25, %v1714_v1  ;;  %v671_v29 = vpop.f32.mrb[15].mxu0 }
  0xfd   :  { %1108 = vst.msk [vmem:[%s2109_s4 + $0x168] sm:$0xff] %vm1062_vm2, %v1043_v22  ;;  %v974_v28 = vmul.f32 %v1336_v26, %v1714_v1  ;;  %v831_v30 = vpop.f32.mrb[15].mxu1  ;;  %1075 = vst.msk [vmem:[%s2109_s4 + $0x60] sm:$0xff] %vm1062_vm2, %v1010_v23  ;;  %v941_v31 = vmul.f32 %v1714_v1, %v671_v29 }
  0xfe   :  { %1107 = vst.msk [vmem:[%s2109_s4 + $0x160] sm:$0xff] %vm1062_vm2, %v1042_v24  ;;  %v973_v32 = vmul.f32 %v1714_v1, %v831_v30  ;;  %v1013_v33 = vadd.f32 %v1719_v3, %v942_v27 }
  0xff   :  { %v1045_v34 = vadd.f32 %v1719_v3, %v974_v28  ;;  %v1012_v35 = vadd.f32 %v1719_v3, %v941_v31  ;;  %v1291_v37 = vpop.f32.mrb[16].mxu0 }
 0x100   :  { %v1044_v36 = vadd.f32 %v1719_v3, %v973_v32  ;;  %v1339_v38 = vpop.f32.mrb[16].mxu1  ;;  %1078 = vst.msk [vmem:[%s2109_s4 + $0x78] sm:$0xff] %vm1062_vm2, %v1013_v33  ;;  %v944_v39 = vmul.f32 %v1291_v37, %v1714_v1  ;;  %v681_v41 = vpop.f32.mrb[17].mxu0 }
 0x101   :  { %1110 = vst.msk [vmem:[%s2109_s4 + $0x178] sm:$0xff] %vm1062_vm2, %v1045_v34  ;;  %v976_v40 = vmul.f32 %v1339_v38, %v1714_v1  ;;  %v841_v42 = vpop.f32.mrb[17].mxu1  ;;  %1077 = vst.msk [vmem:[%s2109_s4 + $0x70] sm:$0xff] %vm1062_vm2, %v1012_v35  ;;  %v943_v43 = vmul.f32 %v1714_v1, %v681_v41 }
 0x102   :  { %1109 = vst.msk [vmem:[%s2109_s4 + $0x170] sm:$0xff] %vm1062_vm2, %v1044_v36  ;;  %v975_v44 = vmul.f32 %v1714_v1, %v841_v42  ;;  %v1015_v45 = vadd.f32 %v1719_v3, %v944_v39 }
 0x103   :  { %v1047_v46 = vadd.f32 %v1719_v3, %v976_v40  ;;  %v1014_v47 = vadd.f32 %v1719_v3, %v943_v43  ;;  %v1294_v49 = vpop.f32.mrb[18].mxu0 }
 0x104   :  { %v1046_v48 = vadd.f32 %v1719_v3, %v975_v44  ;;  %v1342_v50 = vpop.f32.mrb[18].mxu1  ;;  %1080 = vst.msk [vmem:[%s2109_s4 + $0x88] sm:$0xff] %vm1062_vm2, %v1015_v45  ;;  %v946_v51 = vmul.f32 %v1294_v49, %v1714_v1  ;;  %v691_v53 = vpop.f32.mrb[19].mxu0 }
 0x105   :  { %1112 = vst.msk [vmem:[%s2109_s4 + $0x188] sm:$0xff] %vm1062_vm2, %v1047_v46  ;;  %v978_v52 = vmul.f32 %v1342_v50, %v1714_v1  ;;  %v851_v54 = vpop.f32.mrb[19].mxu1  ;;  %1079 = vst.msk [vmem:[%s2109_s4 + $0x80] sm:$0xff] %vm1062_vm2, %v1014_v47  ;;  %v945_v55 = vmul.f32 %v1714_v1, %v691_v53 }
 0x106   :  { %1111 = vst.msk [vmem:[%s2109_s4 + $0x180] sm:$0xff] %vm1062_vm2, %v1046_v48  ;;  %v977_v56 = vmul.f32 %v1714_v1, %v851_v54  ;;  %v1017_v57 = vadd.f32 %v1719_v3, %v946_v51 }
 0x107   :  { %v1049_v58 = vadd.f32 %v1719_v3, %v978_v52  ;;  %v1016_v59 = vadd.f32 %v1719_v3, %v945_v55  ;;  %v1297_v61 = vpop.f32.mrb[20].mxu0 }
 0x108   :  { %v1048_v60 = vadd.f32 %v1719_v3, %v977_v56  ;;  %v1345_v62 = vpop.f32.mrb[20].mxu1  ;;  %1082 = vst.msk [vmem:[%s2109_s4 + $0x98] sm:$0xff] %vm1062_vm2, %v1017_v57  ;;  %v948_v63 = vmul.f32 %v1297_v61, %v1714_v1  ;;  %v701_v2 = vpop.f32.mrb[21].mxu0 }
 0x109   :  { %1114 = vst.msk [vmem:[%s2109_s4 + $0x198] sm:$0xff] %vm1062_vm2, %v1049_v58  ;;  %v980_v0 = vmul.f32 %v1345_v62, %v1714_v1  ;;  %v861_v4 = vpop.f32.mrb[21].mxu1  ;;  %1081 = vst.msk [vmem:[%s2109_s4 + $0x90] sm:$0xff] %vm1062_vm2, %v1016_v59  ;;  %v947_v5 = vmul.f32 %v1714_v1, %v701_v2 }
 0x10a   :  { %1113 = vst.msk [vmem:[%s2109_s4 + $0x190] sm:$0xff] %vm1062_vm2, %v1048_v60  ;;  %v979_v6 = vmul.f32 %v1714_v1, %v861_v4  ;;  %v1019_v7 = vadd.f32 %v1719_v3, %v948_v63 }
 0x10b   :  { %v1051_v8 = vadd.f32 %v1719_v3, %v980_v0  ;;  %v1018_v9 = vadd.f32 %v1719_v3, %v947_v5  ;;  %v1300_v11 = vpop.f32.mrb[22].mxu0 }
 0x10c   :  { %v1050_v10 = vadd.f32 %v1719_v3, %v979_v6  ;;  %v1348_v12 = vpop.f32.mrb[22].mxu1  ;;  %1084 = vst.msk [vmem:[%s2109_s4 + $0xa8] sm:$0xff] %vm1062_vm2, %v1019_v7  ;;  %v950_v13 = vmul.f32 %v1300_v11, %v1714_v1  ;;  %v711_v15 = vpop.f32.mrb[23].mxu0 }
 0x10d   :  { %1116 = vst.msk [vmem:[%s2109_s4 + $0x1a8] sm:$0xff] %vm1062_vm2, %v1051_v8  ;;  %v982_v14 = vmul.f32 %v1348_v12, %v1714_v1  ;;  %v871_v16 = vpop.f32.mrb[23].mxu1  ;;  %1083 = vst.msk [vmem:[%s2109_s4 + $0xa0] sm:$0xff] %vm1062_vm2, %v1018_v9  ;;  %v949_v17 = vmul.f32 %v1714_v1, %v711_v15 }
 0x10e   :  { %1115 = vst.msk [vmem:[%s2109_s4 + $0x1a0] sm:$0xff] %vm1062_vm2, %v1050_v10  ;;  %v981_v18 = vmul.f32 %v1714_v1, %v871_v16  ;;  %v1021_v19 = vadd.f32 %v1719_v3, %v950_v13 }
 0x10f   :  { %v1053_v20 = vadd.f32 %v1719_v3, %v982_v14  ;;  %v1020_v21 = vadd.f32 %v1719_v3, %v949_v17  ;;  %v1303_v23 = vpop.f32.mrb[24].mxu0 }
 0x110   :  { %v1052_v22 = vadd.f32 %v1719_v3, %v981_v18  ;;  %v1351_v24 = vpop.f32.mrb[24].mxu1  ;;  %1086 = vst.msk [vmem:[%s2109_s4 + $0xb8] sm:$0xff] %vm1062_vm2, %v1021_v19  ;;  %v952_v25 = vmul.f32 %v1303_v23, %v1714_v1  ;;  %v721_v27 = vpop.f32.mrb[25].mxu0 }
 0x111   :  { %1118 = vst.msk [vmem:[%s2109_s4 + $0x1b8] sm:$0xff] %vm1062_vm2, %v1053_v20  ;;  %v984_v26 = vmul.f32 %v1351_v24, %v1714_v1  ;;  %v881_v28 = vpop.f32.mrb[25].mxu1  ;;  %1085 = vst.msk [vmem:[%s2109_s4 + $0xb0] sm:$0xff] %vm1062_vm2, %v1020_v21  ;;  %v951_v29 = vmul.f32 %v1714_v1, %v721_v27 }
 0x112   :  { %1117 = vst.msk [vmem:[%s2109_s4 + $0x1b0] sm:$0xff] %vm1062_vm2, %v1052_v22  ;;  %v983_v30 = vmul.f32 %v1714_v1, %v881_v28  ;;  %v1023_v31 = vadd.f32 %v1719_v3, %v952_v25 }
 0x113   :  { %v1055_v32 = vadd.f32 %v1719_v3, %v984_v26  ;;  %v1022_v33 = vadd.f32 %v1719_v3, %v951_v29  ;;  %v1306_v35 = vpop.f32.mrb[26].mxu0 }
 0x114   :  { %v1054_v34 = vadd.f32 %v1719_v3, %v983_v30  ;;  %v1354_v36 = vpop.f32.mrb[26].mxu1  ;;  %1088 = vst.msk [vmem:[%s2109_s4 + $0xc8] sm:$0xff] %vm1062_vm2, %v1023_v31  ;;  %v954_v37 = vmul.f32 %v1306_v35, %v1714_v1  ;;  %v731_v39 = vpop.f32.mrb[27].mxu0 }
 0x115   :  { %1120 = vst.msk [vmem:[%s2109_s4 + $0x1c8] sm:$0xff] %vm1062_vm2, %v1055_v32  ;;  %v986_v38 = vmul.f32 %v1354_v36, %v1714_v1  ;;  %v891_v40 = vpop.f32.mrb[27].mxu1  ;;  %1087 = vst.msk [vmem:[%s2109_s4 + $0xc0] sm:$0xff] %vm1062_vm2, %v1022_v33  ;;  %v953_v41 = vmul.f32 %v1714_v1, %v731_v39 }
 0x116   :  { %1119 = vst.msk [vmem:[%s2109_s4 + $0x1c0] sm:$0xff] %vm1062_vm2, %v1054_v34  ;;  %v985_v42 = vmul.f32 %v1714_v1, %v891_v40  ;;  %v1025_v43 = vadd.f32 %v1719_v3, %v954_v37 }
 0x117   :  { %v1057_v44 = vadd.f32 %v1719_v3, %v986_v38  ;;  %v1024_v45 = vadd.f32 %v1719_v3, %v953_v41  ;;  %v1309_v47 = vpop.f32.mrb[28].mxu0 }
 0x118   :  { %v1056_v46 = vadd.f32 %v1719_v3, %v985_v42  ;;  %v1357_v48 = vpop.f32.mrb[28].mxu1  ;;  %1090 = vst.msk [vmem:[%s2109_s4 + $0xd8] sm:$0xff] %vm1062_vm2, %v1025_v43  ;;  %v956_v49 = vmul.f32 %v1309_v47, %v1714_v1  ;;  %v741_v51 = vpop.f32.mrb[29].mxu0 }
 0x119   :  { %1122 = vst.msk [vmem:[%s2109_s4 + $0x1d8] sm:$0xff] %vm1062_vm2, %v1057_v44  ;;  %v988_v50 = vmul.f32 %v1357_v48, %v1714_v1  ;;  %v901_v52 = vpop.f32.mrb[29].mxu1  ;;  %1089 = vst.msk [vmem:[%s2109_s4 + $0xd0] sm:$0xff] %vm1062_vm2, %v1024_v45  ;;  %v955_v53 = vmul.f32 %v1714_v1, %v741_v51 }
 0x11a   :  { %1121 = vst.msk [vmem:[%s2109_s4 + $0x1d0] sm:$0xff] %vm1062_vm2, %v1056_v46  ;;  %v987_v54 = vmul.f32 %v1714_v1, %v901_v52  ;;  %v1027_v55 = vadd.f32 %v1719_v3, %v956_v49 }
 0x11b   :  { %v1059_v56 = vadd.f32 %v1719_v3, %v988_v50  ;;  %v1026_v57 = vadd.f32 %v1719_v3, %v955_v53  ;;  %v1312_v59 = vpop.f32.mrb[30].mxu0 }
 0x11c   :  { %v1058_v58 = vadd.f32 %v1719_v3, %v987_v54  ;;  %v1360_v60 = vpop.f32.mrb[30].mxu1  ;;  %1092 = vst.msk [vmem:[%s2109_s4 + $0xe8] sm:$0xff] %vm1062_vm2, %v1027_v55  ;;  %v958_v61 = vmul.f32 %v1312_v59, %v1714_v1  ;;  %v751_v63 = vpop.f32.mrb[31].mxu0 }
 0x11d   :  { %1124 = vst.msk [vmem:[%s2109_s4 + $0x1e8] sm:$0xff] %vm1062_vm2, %v1059_v56  ;;  %v990_v62 = vmul.f32 %v1360_v60, %v1714_v1  ;;  %v911_v0 = vpop.f32.mrb[31].mxu1  ;;  %1091 = vst.msk [vmem:[%s2109_s4 + $0xe0] sm:$0xff] %vm1062_vm2, %v1026_v57  ;;  %v957_v2 = vmul.f32 %v1714_v1, %v751_v63 }
 0x11e   :  { %1123 = vst.msk [vmem:[%s2109_s4 + $0x1e0] sm:$0xff] %vm1062_vm2, %v1058_v58  ;;  %v989_v4 = vmul.f32 %v1714_v1, %v911_v0  ;;  %v1029_v5 = vadd.f32 %v1719_v3, %v958_v61 }
 0x11f   :  { %v1061_v6 = vadd.f32 %v1719_v3, %v990_v62  ;;  %v1028_v7 = vadd.f32 %v1719_v3, %v957_v2 }
 0x120   :  { %v1060_v8 = vadd.f32 %v1719_v3, %v989_v4  ;;  %1094 = vst.msk [vmem:[%s2109_s4 + $0xf8] sm:$0xff] %vm1062_vm2, %v1029_v5 }
 0x121   :  { %1126 = vst.msk [vmem:[%s2109_s4 + $0x1f8] sm:$0xff] %vm1062_vm2, %v1061_v6  ;;  %1093 = vst.msk [vmem:[%s2109_s4 + $0xf0] sm:$0xff] %vm1062_vm2, %v1028_v7 }
 0x122   :  { %1125 = vst.msk [vmem:[%s2109_s4 + $0x1f0] sm:$0xff] %vm1062_vm2, %v1060_v8 }

</bundles_post_ra>
